<compile_context>
chip_gen: v7x
topology: tpu7x:2x2x1
jax: 0.10.0
libtpu: 0.0.40
codegen_flags: <defaults>
</compile_context>

<pallas_src>
import functools

import jax
import jax.numpy as jnp
from jax.experimental import pallas as pl
from jax.experimental.pallas import tpu as pltpu

_VMEM_LIMIT_BYTES = 32 * 1024 * 1024  # raise v5e's 16 MiB default; v6e/v7x default


def _round_up(x, m):
    return ((x + m - 1) // m) * m


def _per_row_loss(logits, targets):
    """loss_j = 2 - 2 * softmax(logits_j)[targets_j]  ->  (rows, 1) float32."""
    logits = logits.astype(jnp.float32)
    rows, c = logits.shape

    # Row-wise softmax pieces over the class (lane) axis.
    row_max = jnp.max(logits, axis=-1, keepdims=True)          # (rows, 1)
    exps = jnp.exp(logits - row_max)                            # (rows, C)
    denom = jnp.sum(exps, axis=-1, keepdims=True)               # (rows, 1)

    # Select the target-class probability numerator without materializing a
    # float one-hot (saves a full-tile cast + multiply).
    col_ids = jax.lax.broadcasted_iota(jnp.int32, (rows, c), 1)
    num = jnp.sum(jnp.where(col_ids == targets, exps, 0.0),
                  axis=-1, keepdims=True)                       # (rows, 1)

    # Per-row reciprocal instead of a divide (EUP path). approx=True is an
    # option if the accuracy budget allows; kept exact here for f32 outputs.
    p_correct = num * pl.reciprocal(denom)                      # (rows, 1)
    return 2.0 - 2.0 * p_correct


def _mae_reduce_kernel(logits_ref, targets_ref, out_ref, *,
                       n_valid, block_rows, tiles_per_core):
    """Fused batch sum. Each parallel index p owns a private (8,128) partial."""
    p = pl.program_id(0)   # parallel axis (core split)
    i = pl.program_id(1)   # arbitrary (reduction) axis

    @pl.when(i == 0)
    def _():
        out_ref[...] = jnp.zeros_like(out_ref)

    loss = _per_row_loss(logits_ref[...], targets_ref[...])     # (block_rows, 1)

    # Mask padded / out-of-range rows (ragged final tile + clamped spare tile).
    # Must stay a select (jnp.where): OOB rows may hold NaN/Inf garbage.
    tile = p * tiles_per_core + i
    row_ids = tile * block_rows + jax.lax.broadcasted_iota(jnp.int32, loss.shape, 0)
    loss = jnp.where(row_ids < n_valid, loss, 0.0)

    out_ref[...] += jnp.sum(loss)    # scalar broadcast-add into the (8,128) block


def _mae_per_sample_kernel(logits_ref, targets_ref, out_ref):
    # TODO(synk): lane-dense (1, block_rows) output needs an in-kernel
    # sublane->lane relayout of the per-row loss column; kept as a (rows, 1)
    # column store for lowering robustness — writeback is only ~4/(4*C) of the
    # read traffic so the lane-sparse store is a bounded cost on this path.
    loss = _per_row_loss(logits_ref[...], targets_ref[...])
    out_ref[...] = loss.astype(out_ref.dtype)


def _choose_block_rows(n, c, *, target_block_bytes=4 << 20, vmem_budget_bytes=20 << 20):
    """Pick a sublane tile size giving multi-MiB DMAs within the VMEM budget.

    VMEM accounting uses the lane-padded width: a (rows, C) f32 block occupies
    rows * round_up(C,128) * 4 bytes, and the (rows, 1) int32 targets block is
    padded to 128 lanes.  Both inputs are double-buffered by the pipeline.
    """
    c_pad = _round_up(max(c, 1), 128)
    per_row_bytes = 2 * 4 * (c_pad + 128)          # 2 pipeline buffers per input
    rows_vmem = max(8, vmem_budget_bytes // per_row_bytes)
    rows_dma = max(8, target_block_bytes // (4 * c_pad))
    rows = (min(rows_vmem, rows_dma) // 8) * 8
    if n >= 8:
        # Never exceed the array's sublane extent (keeps block_shape % 8 == 0
        # legal without padding the array).
        rows = max(8, min(rows, (n // 8) * 8))
    else:
        rows = n                                    # block == full (tiny) batch dim
    return rows


def mean_absolute_error_pallas(logits, targets, *, reduction="mean", block_rows=None):
    """MAE loss. logits: (N, C) float, targets: (N,) int."""
    n, c = logits.shape
    if block_rows is None:
        block_rows = _choose_block_rows(n, c)
    num_tiles = pl.cdiv(n, block_rows)

    targets_2d = targets.astype(jnp.int32).reshape(n, 1)

    if reduction in ("mean", "sum"):
        # Split the reduction across (up to) 2 TensorCores (v7x megacore);
        # on 1-TC chips the parallel axis just iterates serially.
        num_cores = 2 if num_tiles >= 2 else 1
        tiles_per_core = -(-num_tiles // num_cores)

        def tile_map(p, i):
            t = p * tiles_per_core + i
            # Clamp the (at most one) spare tile onto the last real tile; its
            # rows are fully masked in-kernel so it contributes zero.
            return (jnp.minimum(t, num_tiles - 1), 0)

        partials = pl.pallas_call(
            functools.partial(_mae_reduce_kernel, n_valid=n,
                              block_rows=block_rows, tiles_per_core=tiles_per_core),
            out_shape=jax.ShapeDtypeStruct((8, 128 * num_cores), jnp.float32),
            grid=(num_cores, tiles_per_core),
            in_specs=[
                pl.BlockSpec((block_rows, c), tile_map),
                pl.BlockSpec((block_rows, 1), tile_map),
            ],
            out_specs=pl.BlockSpec((8, 128), lambda p, i: (0, p)),
            compiler_params=pltpu.CompilerParams(
                dimension_semantics=("parallel", "arbitrary"),
                vmem_limit_bytes=_VMEM_LIMIT_BYTES),
        )(logits, targets_2d)

        total = jnp.sum(partials[0, ::128])   # one partial per core block
        return total / n if reduction == "mean" else total

    elif reduction == "none":
        per_sample = pl.pallas_call(
            _mae_per_sample_kernel,
            out_shape=jax.ShapeDtypeStruct((n, 1), jnp.float32),
            grid=(num_tiles,),
            in_specs=[
                pl.BlockSpec((block_rows, c), lambda i: (i, 0)),
                pl.BlockSpec((block_rows, 1), lambda i: (i, 0)),
            ],
            out_specs=pl.BlockSpec((block_rows, 1), lambda i: (i, 0)),
            compiler_params=pltpu.CompilerParams(
                dimension_semantics=("parallel",),     # independent tiles -> megacore
                vmem_limit_bytes=_VMEM_LIMIT_BYTES),
        )(logits, targets_2d)
        return per_sample[:, 0]

    else:
        raise ValueError(f"unknown reduction: {reduction}")

    # TODO(synk): for C << 128 a lane-dense batch layout (pack samples along
    # lanes) would raise VPU/EUP/XLU lane utilization ~12x, but requires a
    # wrapper-side relayout of the logits (extra HBM pass) or in-kernel
    # sublane<->lane packing; left out since this kernel is HBM/DMA-bound.


def _reference_mae(logits, targets, num_classes, reduction="mean"):
    # Pure-JAX reference mirroring the PyTorch MeanAbsoluteError module.
    one_hot = jax.nn.one_hot(targets, num_classes, dtype=jnp.float32)
    preds = jax.nn.softmax(logits.astype(jnp.float32), axis=1)
    loss = 2.0 - 2.0 * jnp.sum(one_hot * preds, axis=1)
    if reduction == "mean":
        return jnp.mean(loss)
    elif reduction == "sum":
        return jnp.sum(loss)
    return loss


if __name__ == "__main__":
    # Deterministic "args": num_classes=10; small batch.
    num_classes = 10
    batch = 8

    key = jax.random.PRNGKey(0)
    k1, k2, k3, k4 = jax.random.split(key, 4)
    logits = jax.random.normal(k1, (batch, num_classes), dtype=jnp.float32)
    targets = jax.random.randint(k2, (batch,), 0, num_classes, dtype=jnp.int32)

    out = mean_absolute_error_pallas(logits, targets, reduction="mean")
    out = jax.block_until_ready(out)
    ref = _reference_mae(logits, targets, num_classes, reduction="mean")
    assert jnp.allclose(out, ref, atol=1e-5, rtol=1e-5), (out, ref)

    # Multi-tile coverage: 20 rows (no wrapper pad).
    #   default block_rows -> 16-row blocks, ragged 4-row final tile
    #   block_rows=8       -> 3 tiles, 2-way core split with one clamped tile
    batch2 = 20
    logits2 = jax.random.normal(k3, (batch2, num_classes), dtype=jnp.float32)
    targets2 = jax.random.randint(k4, (batch2,), 0, num_classes, dtype=jnp.int32)
    for br in (None, 8):
        for red in ("mean", "sum", "none"):
            got = jax.block_until_ready(
                mean_absolute_error_pallas(logits2, targets2, reduction=red, block_rows=br))
            want = _reference_mae(logits2, targets2, num_classes, reduction=red)
            assert jnp.allclose(got, want, atol=1e-5, rtol=1e-5), (br, red, got, want)

    print("KERNEL_OK")
</pallas_src>

<mosaic_0001>
module attributes {stable_mosaic.version = 11 : i64} {
  func.func @_mae_reduce_kernel(%arg0: i32, %arg1: i32, %arg2: memref<8x10xf32, #tpu.memory_space<vmem>>, %arg3: memref<8x1xi32, #tpu.memory_space<vmem>>, %arg4: memref<8x128xf32, #tpu.memory_space<vmem>>) attributes {dimension_semantics = [#tpu.dimension_semantics<parallel>, #tpu.dimension_semantics<arbitrary>], iteration_bounds = array<i64: 1, 1>, scalar_prefetch = 0 : i64, scratch_operands = 0 : i64, tpu.core_type = #tpu.core_type<tc>, window_params = [{transform_indices = @transform_0, window_bounds = array<i64: 8, 10>}, {transform_indices = @transform_1, window_bounds = array<i64: 8, 1>}, {transform_indices = @transform_2, window_bounds = array<i64: 8, 128>}]} {
    %c0_i32 = arith.constant 0 : i32
    %0 = arith.cmpi eq, %arg1, %c0_i32 : i32
    %1 = arith.extui %0 : i1 to i32
    %c0_i32_0 = arith.constant 0 : i32
    %2 = arith.cmpi ne, %1, %c0_i32_0 : i32
    scf.if %2 {
      %cst_16 = arith.constant 0.000000e+00 : f32
      %43 = vector.broadcast %cst_16 : f32 to vector<8x128xf32>
      %c0_17 = arith.constant 0 : index
      %c0_18 = arith.constant 0 : index
      %44 = vector.load %arg4[%c0_17, %c0_18] : memref<8x128xf32, #tpu.memory_space<vmem>>, vector<8x128xf32>
      tpu.vector_store %arg4[%c0_17, %c0_18], %43 {strides = array<i32>} : memref<8x128xf32, #tpu.memory_space<vmem>>, vector<8x128xf32>,
    } else {
    }
    %c0 = arith.constant 0 : index
    %c0_1 = arith.constant 0 : index
    %3 = vector.load %arg2[%c0, %c0_1] : memref<8x10xf32, #tpu.memory_space<vmem>>, vector<8x10xf32>
    %c0_2 = arith.constant 0 : index
    %c0_3 = arith.constant 0 : index
    %4 = vector.load %arg3[%c0_2, %c0_3] : memref<8x1xi32, #tpu.memory_space<vmem>>, vector<8x1xi32>
    %cst = arith.constant dense<0xFF800000> : vector<8xf32>
    %5 = vector.multi_reduction <maximumf>, %3, %cst [1] : vector<8x10xf32> to vector<8xf32>
    %6 = vector.shape_cast %5 : vector<8xf32> to vector<8x1xf32>
    %7 = vector.broadcast %6 : vector<8x1xf32> to vector<8x10xf32>
    %8 = arith.subf %3, %7 : vector<8x10xf32>
    %9 = math.exp %8 : vector<8x10xf32>
    %cst_4 = arith.constant dense<0.000000e+00> : vector<8xf32>
    %10 = vector.multi_reduction <add>, %9, %cst_4 [1] : vector<8x10xf32> to vector<8xf32>
    %11 = vector.shape_cast %10 : vector<8xf32> to vector<8x1xf32>
    %12 = tpu.iota {dimensions = array<i32: 1>} : vector<8x10xi32>
    %13 = vector.broadcast %4 : vector<8x1xi32> to vector<8x10xi32>
    %14 = arith.cmpi eq, %12, %13 : vector<8x10xi32>
    %cst_5 = arith.constant 0.000000e+00 : f32
    %15 = vector.broadcast %cst_5 : f32 to vector<8x10xf32>
    %16 = arith.select %14, %9, %15 : vector<8x10xi1>, vector<8x10xf32>
    %cst_6 = arith.constant dense<0.000000e+00> : vector<8xf32>
    %17 = vector.multi_reduction <add>, %16, %cst_6 [1] : vector<8x10xf32> to vector<8xf32>
    %18 = vector.shape_cast %17 : vector<8xf32> to vector<8x1xf32>
    %19 = tpu.reciprocal %11 : vector<8x1xf32> -> vector<8x1xf32>
    %20 = arith.mulf %18, %19 : vector<8x1xf32>
    %cst_7 = arith.constant 2.000000e+00 : f32
    %21 = vector.broadcast %cst_7 : f32 to vector<8x1xf32>
    %22 = arith.mulf %21, %20 : vector<8x1xf32>
    %cst_8 = arith.constant 2.000000e+00 : f32
    %23 = vector.broadcast %cst_8 : f32 to vector<8x1xf32>
    %24 = arith.subf %23, %22 : vector<8x1xf32>
    %c1_i32 = arith.constant 1 : i32
    %25 = arith.muli %arg0, %c1_i32 : i32
    %26 = arith.addi %25, %arg1 : i32
    %c8_i32 = arith.constant 8 : i32
    %27 = arith.muli %26, %c8_i32 : i32
    %28 = tpu.iota {dimensions = array<i32: 0>} : vector<8x1xi32>
    %29 = vector.broadcast %27 : i32 to vector<8x1xi32>
    %30 = arith.addi %29, %28 : vector<8x1xi32>
    %c8_i32_9 = arith.constant 8 : i32
    %31 = vector.broadcast %c8_i32_9 : i32 to vector<8x1xi32>
    %32 = arith.cmpi slt, %30, %31 : vector<8x1xi32>
    %cst_10 = arith.constant 0.000000e+00 : f32
    %33 = vector.broadcast %cst_10 : f32 to vector<8x1xf32>
    %34 = arith.select %32, %24, %33 : vector<8x1xi1>, vector<8x1xf32>
    %c0_11 = arith.constant 0 : index
    %c0_12 = arith.constant 0 : index
    %35 = vector.load %arg4[%c0_11, %c0_12] : memref<8x128xf32, #tpu.memory_space<vmem>>, vector<8x128xf32>
    %36 = vector.shape_cast %34 : vector<8x1xf32> to vector<1x8x1xf32>
    %cst_13 = arith.constant dense<0.000000e+00> : vector<1xf32>
    %37 = vector.multi_reduction <add>, %36, %cst_13 [1, 2] : vector<1x8x1xf32> to vector<1xf32>
    %38 = vector.shape_cast %37 : vector<1xf32> to vector<1x1x1xf32>
    %39 = vector.extract %38[0, 0, 0] : f32 from vector<1x1x1xf32>
    %40 = vector.broadcast %39 : f32 to vector<8x128xf32>
    %41 = arith.addf %35, %40 : vector<8x128xf32>
    %c0_14 = arith.constant 0 : index
    %c0_15 = arith.constant 0 : index
    %42 = vector.load %arg4[%c0_14, %c0_15] : memref<8x128xf32, #tpu.memory_space<vmem>>, vector<8x128xf32>
    tpu.vector_store %arg4[%c0_14, %c0_15], %41 {strides = array<i32>} : memref<8x128xf32, #tpu.memory_space<vmem>>, vector<8x128xf32>,
    return
  }
  func.func @transform_0(%arg0: i32, %arg1: i32) -> (i32, i32) {
    %c1_i32 = arith.constant 1 : i32
    %0 = arith.muli %arg0, %c1_i32 : i32
    %1 = arith.addi %0, %arg1 : i32
    %c0_i32 = arith.constant 0 : i32
    %2 = arith.minsi %1, %c0_i32 : i32
    %c0_i32_0 = arith.constant 0 : i32
    %c0_i32_1 = arith.constant 0 : i32
    return %2, %c0_i32_0 : i32, i32
  }
  func.func @transform_1(%arg0: i32, %arg1: i32) -> (i32, i32) {
    %c1_i32 = arith.constant 1 : i32
    %0 = arith.muli %arg0, %c1_i32 : i32
    %1 = arith.addi %0, %arg1 : i32
    %c0_i32 = arith.constant 0 : i32
    %2 = arith.minsi %1, %c0_i32 : i32
    %c0_i32_0 = arith.constant 0 : i32
    %c0_i32_1 = arith.constant 0 : i32
    return %2, %c0_i32_0 : i32, i32
  }
  func.func @transform_2(%arg0: i32, %arg1: i32) -> (i32, i32) {
    %c0_i32 = arith.constant 0 : i32
    %c0_i32_0 = arith.constant 0 : i32
    return %c0_i32, %arg0 : i32, i32
  }
}

</mosaic_0001>

<bundles_post_ra>
// kernel: tpu_custom_call.1
= control target key start
LH: loop header
LB: loop body
LE: loop exit
PB: predicated region body
PF: predicated region fallthrough
CT: control target
= control target key end

     0   :  { %vm73_vm0 = vcmask 80896   ;;  %s218_s0 = inlined_call_operand.vmem [shape: f32[8,10], index: 0, kind: input, shape index: {}]   ;;  %s219_s1 = inlined_call_operand.vmem [shape: s32[8,1], index: 1, kind: input, shape index: {}]   ;;  %s220_s2 = inlined_call_operand.hbm [shape: f32[8,128], index: 2, kind: output, shape index: {}]  }
   0x1   :  { %v71_v0 = vld [vmem:[%s218_s0] sm:$0xff] }
   0x2   :  { %7 = vsyncpa [#allocation3], 0  ;;  %v74_v1 = vsel %vm73_vm0, %v71_v0, -inf  ;;  %v180_v2 = vmov 0   ;;  %v72_v3 = vld [vmem:[%s219_s1] sm:$0xff]  ;;  %v83_v7 = vlaneseq  ;;  %vm106_vm2 = vcmask 7168  }
   0x3   :  { %151 = vset.pattern.permute.xlu0 %v180_v2  ;;  %s181_s0 = smov [#allocation2]  }
   0x4   :  { %75 = vmax.xlane.f32.xlu0 %v74_v1  ;;  %v84_v8 = vand.u32 127, %v83_v7  ;;  %s126_s1 = sshll.u32 %s181_s0, 4  ;;  %s127_s1 = int_to_ptr.vmem [resolvable:$true] %s126_s1 }
   0x5   :  { %s156_s14 = scalar_lea.vmem %s127_s1, 128  ;;  %p161_p1 = scmp.lt.s32.totalorder %s127_s1, %s127_s1 }
   0x6   :  { %p157_p0 = scmp.ne.s32.totalorder %s127_s1, %s156_s14  ;;  %p162_p2 = scmp.lt.s32.totalorder %s156_s14, %s156_s14 }
   0x8   :  { %p163_p3 = por %p162_p2, %p161_p1 }
   0xa   :  { %p164_p4 = pnand %p163_p3, %p157_p0 }
  0x1a   :  { %86 = vperm.xlu0 %151, %v72_v3  }
  0x91   :  { %v76_v4 = vpop.xlane.xlu0 %75 }
  0x92   :  { %v77_v5 = vsub.f32 %v71_v0, %v76_v4 }
  0x94   :  { %v78_v6 = vmul.f32 1.442695, %v77_v5 }
  0x96   :  { %152 = vpow2.f32 %v78_v6 }
  0x99   :  { %v87_v9 = vpop.permute.xlu0 %86 }
  0x9a   :  { %vm88_vm1 = vcmp.eq.s32.totalorder %v84_v8, %v87_v9 }
  0xa0   :  { %v153_v10 = vpop.eup %152 }
  0xa1   :  { %v80_v11 = vsel %vm73_vm0, %v153_v10, 0.0  ;;  %v89_v12 = vsel %vm88_vm1, %v153_v10, 0.0 }
  0xa2   :  { %81 = vadd.xlane.f32.xlu1 %v80_v11  ;;  %v90_v13 = vsel %vm73_vm0, %v89_v12, 0.0 }
  0xa6   :  { %91 = vadd.xlane.f32.xlu1 %v90_v13 }
 0x12f   :  { %v82_v14 = vpop.xlane.xlu1 %81 }
 0x130   :  { %154 = vrcp.f32 %v82_v14 }
 0x133   :  { %v92_v16 = vpop.xlane.xlu1 %91 }
 0x13a   :  { %v155_v15 = vpop.eup %154 }
 0x13b   :  { %v94_v17 = vmul.f32 %v155_v15, %v92_v16 }
 0x13d   :  { %v95_v18 = vmul.f32 2.0, %v94_v17 }
 0x13f   :  { %v96_v19 = vsub.f32 2.0, %v95_v18 }
 0x141   :  { %v107_v20 = vsel %vm106_vm2, %v96_v19, 0.0 }
 0x142   :  { %108 = vadd.xlane.f32.xlu1 %v107_v20 }
 0x1cf   :  { %v109_v21 = vpop.xlane.xlu1 %108 }
 0x1d0   :  { %v110_v22 = vrot.slane %v109_v21, 4 }
 0x1d2   :  { %v111_v23 = vadd.f32 %v110_v22, %v109_v21 }
 0x1d4   :  { %v112_v24 = vrot.slane %v111_v23, 2 }
 0x1d6   :  { %v113_v25 = vadd.f32 %v112_v24, %v111_v23 }
 0x1d8   :  { %v114_v26 = vrot.slane %v113_v25, 1 }
 0x1da   :  { %v115_v27 = vadd.f32 %v114_v26, %v113_v25 }
 0x1dc   :  { %146 = vpush %v115_v27 }
 0x20d   :  { %s147_s13 = spop %146 }
 0x20e   :  { %v117_v28 = vstv %s147_s13 }
 0x20f   :  { %119 = vst [vmem:[#allocation2] sm:$0xff] %v117_v28 }
 0x210   :  { %167 = shalt.err (!%p164_p4)
}
 0x211   :  { %s168_s17 = scalar_lea.hbm %s220_s2, 128 }
 0x212   :  { %p169_p5 = scmp.ne.s32.totalorder %s220_s2, %s168_s17  ;;  %p172_p6 = scmp.lt.u32.totalorder %s168_s17, %s220_s2 }
 0x214   :  { %p174_p7 = pnand %p172_p6, %p169_p5 }
 0x216   :  { %177 = shalt.err (!%p174_p7)
}
 0x217   :  { %129 = dma.vmem_to_hbm [thread:$0]  %s127_s1, 128, %s220_s2, [#allocation3]  }
 0x218   :  { %178 = dma.done.wait [#allocation3], 128  }
 0x219   :  { %179 = vsyncadd [#allocation3], 4294967168 }
 0x21a   :  { %133 = vsyncpa [#allocation3], 1 }

</bundles_post_ra>
